<compile_context>
chip_gen: v6e
topology: v6e:2x2x1
jax: 0.10.0
libtpu: 0.0.40
codegen_flags: <defaults>
</compile_context>

<pallas_src>
import functools

import jax
import jax.numpy as jnp
import numpy as np
from jax.experimental import pallas as pl
from jax.experimental.pallas import tpu as pltpu


def _conv_bn_relu_kernel(x_ref, w_ref, bias_ref, o_ref, *,
                         KH, KW, stride, dilation, tile_H, W_out, Cin, Cout):
    """One (image, H-tile) block: fused im2col -> single MXU matmul -> bias + ReLU."""
    # x_ref:    (tile_Hin, Wp*Cin)    bf16, zero-padded rows incl. halo, lane-dense (w, cin)
    # w_ref:    (KH*span, Cout)       bf16, BN scale folded, dilation zero-stuffed
    # bias_ref: (1, W_out*Cout)       f32 folded BN bias, tiled across W_out
    # o_ref:    (tile_H, W_out*Cout)  bf16, lane-dense
    span = ((KW - 1) * dilation + 1) * Cin
    x = x_ref[...]

    # Fused-KH im2col: one lane-contiguous `span` window per (kh, output column),
    # concatenated into a single (tile_H*W_out, KH*span) patch -> ONE MXU push.
    kh_parts = []
    for kh in range(KH):
        h0 = kh * dilation
        rows = x[h0:h0 + (tile_H - 1) * stride + 1:stride, :]         # (tile_H, Wp*Cin)
        kh_parts.append(jnp.concatenate(
            [rows[:, w * stride * Cin:w * stride * Cin + span] for w in range(W_out)],
            axis=0))                                                  # (W_out*tile_H, span)
    patch = jnp.concatenate(kh_parts, axis=1)                         # (W_out*tile_H, KH*span)

    part = jnp.dot(patch, w_ref[...],
                   preferred_element_type=jnp.float32)                # (W_out*tile_H, Cout)

    # Pack back into the lane-dense (tile_H, W_out*Cout) layout (aligned sublane slices).
    y = jnp.concatenate([part[w * tile_H:(w + 1) * tile_H, :] for w in range(W_out)],
                        axis=1)                                       # (tile_H, W_out*Cout)
    y = jnp.maximum(y + bias_ref[...], 0.0)                           # folded BN bias + ReLU (f32)
    o_ref[...] = y.astype(o_ref.dtype)


def basic_conv2d(x_nchw, weight_oihw, gamma, beta, running_mean, running_var,
                 *, stride=1, padding=0, dilation=1, eps=1e-5, tile_h=None):
    """BasicConv2d forward (PyTorch NCHW/OIHW, eval-mode BatchNorm).  Returns bf16 NCHW."""
    N, Cin, H, W = x_nchw.shape
    Cout, Cin_w, KH, KW = weight_oihw.shape
    assert Cin == Cin_w
    H_out = (H + 2 * padding - dilation * (KH - 1) - 1) // stride + 1
    W_out = (W + 2 * padding - dilation * (KW - 1) - 1) // stride + 1
    Hp, Wp = H + 2 * padding, W + 2 * padding
    span = ((KW - 1) * dilation + 1) * Cin

    f32 = jnp.float32
    # Fold eval-mode BatchNorm: per-channel scale into the weight, bias kept separate.
    inv_std = 1.0 / jnp.sqrt(running_var.astype(f32) + eps)
    scale = gamma.astype(f32) * inv_std                                      # (Cout,)
    bias = beta.astype(f32) - running_mean.astype(f32) * scale               # (Cout,)
    bias_tiled = jnp.tile(bias.reshape(1, Cout), (1, W_out))                 # (1, W_out*Cout)

    # Weight (Cout,Cin,KH,KW): fold scale, zero-stuff dilation gaps, flatten to one
    # (KH*span, Cout) contraction so the kernel needs a single MXU matmul per block.
    w = weight_oihw.astype(f32) * scale[:, None, None, None]
    w = jnp.transpose(w, (2, 3, 1, 0))                                       # (KH, KW, Cin, Cout)
    w_full = jnp.zeros((KH, (KW - 1) * dilation + 1, Cin, Cout), f32)
    w_full = w_full.at[:, ::dilation, :, :].set(w)
    w2d = w_full.reshape(KH * span, Cout).astype(jnp.bfloat16)

    # Generation-aware VMEM budget (~75% of physical: ~48 MiB v7x, ~96 MiB v5e/v6e).
    try:
        vmem_cap = int(pltpu.get_tpu_info().vmem_capacity_bytes)
    except Exception:  # interpret mode / API mismatch -> conservative (v7x-sized) fallback
        vmem_cap = 64 << 20
    vmem_cap = vmem_cap * 3 // 4

    # H_out tile: keep f32 temporaries <~32 vregs and the block working set in budget.
    if tile_h is None:
        def _footprint(th):
            t_in = ((th - 1) * stride + (KH - 1) * dilation + 1) * Wp * Cin * 2
            t_out = th * W_out * Cout * 2
            patch_b = th * W_out * KH * span * 2
            part_b = th * W_out * Cout * 4
            return 2 * (t_in + t_out) + 2 * (patch_b + part_b)
        tile_h = H_out
        while tile_h > 8 and (_footprint(tile_h) > vmem_cap // 2
                              or tile_h * W_out * Cout * 4 > (128 << 10)):
            tile_h = -(-tile_h // 2)
    tile_H = max(1, min(int(tile_h), H_out))
    n_ht = pl.cdiv(H_out, tile_H)
    tile_Hin = (tile_H - 1) * stride + (KH - 1) * dilation + 1
    Hp_need = (n_ht - 1) * tile_H * stride + tile_Hin        # rows needed incl. last tile

    # Activations: NCHW -> NHWC bf16 -> zero-pad -> (N, Hp', Wp*Cin)  (one fused XLA copy).
    x = jnp.transpose(x_nchw.astype(jnp.bfloat16), (0, 2, 3, 1))
    x = jnp.pad(x, ((0, 0), (padding, padding + max(0, Hp_need - Hp)),
                    (padding, padding), (0, 0)))
    x = x.reshape(N, max(Hp, Hp_need), Wp * Cin)
    # Overlapping H tiles with halo rows so plain Blocked BlockSpecs drive the pipeline.
    # TODO(synk): express the halo with a pl.Element-indexed H dim / manual DMA instead.
    x_tiles = jnp.stack([x[:, t * tile_H * stride:t * tile_H * stride + tile_Hin, :]
                         for t in range(n_ht)], axis=1)      # (N, n_ht, tile_Hin, Wp*Cin)

    kernel = functools.partial(
        _conv_bn_relu_kernel, KH=KH, KW=KW, stride=stride, dilation=dilation,
        tile_H=tile_H, W_out=W_out, Cin=Cin, Cout=Cout)

    # Explicit VMEM budget: double-buffered in/out blocks + weights + bias + im2col temps.
    x_b = tile_Hin * Wp * Cin * 2
    o_b = tile_H * W_out * Cout * 2
    patch_b = tile_H * W_out * KH * span * 2
    part_b = tile_H * W_out * Cout * 4
    need = (2 * (x_b + o_b) + KH * span * Cout * 2 + W_out * Cout * 4
            + 2 * (patch_b + part_b) + (4 << 20))
    vmem_limit = int(min(max(need, 16 << 20), vmem_cap))

    out = pl.pallas_call(
        kernel,
        out_shape=jax.ShapeDtypeStruct((N, n_ht, tile_H, W_out * Cout), jnp.bfloat16),
        grid_spec=pltpu.PrefetchScalarGridSpec(
            num_scalar_prefetch=0,
            grid=(N, n_ht),
            in_specs=[
                pl.BlockSpec((None, None, tile_Hin, Wp * Cin), lambda n, t: (n, t, 0, 0)),
                pl.BlockSpec((KH * span, Cout), lambda n, t: (0, 0)),
                pl.BlockSpec((1, W_out * Cout), lambda n, t: (0, 0)),
            ],
            out_specs=pl.BlockSpec((None, None, tile_H, W_out * Cout),
                                   lambda n, t: (n, t, 0, 0)),
        ),
        compiler_params=pltpu.CompilerParams(
            dimension_semantics=("parallel", "parallel"),
            vmem_limit_bytes=vmem_limit),
    )(x_tiles, w2d, bias_tiled)

    # (N, n_ht, tile_H, W_out*Cout) -> NCHW (bf16) to match the module's output layout.
    out = out.reshape(N, n_ht * tile_H, W_out, Cout)[:, :H_out]
    return jnp.transpose(out, (0, 3, 1, 2))


def _reference(x_nchw, weight_oihw, gamma, beta, running_mean, running_var,
               *, stride=1, padding=0, dilation=1, eps=1e-5):
    y = jax.lax.conv_general_dilated(
        x_nchw.astype(jnp.float32), weight_oihw.astype(jnp.float32),
        window_strides=(stride, stride),
        padding=((padding, padding), (padding, padding)),
        rhs_dilation=(dilation, dilation),
        dimension_numbers=("NCHW", "OIHW", "NCHW"))
    inv_std = 1.0 / jnp.sqrt(running_var + eps)
    y = (y - running_mean[None, :, None, None]) * inv_std[None, :, None, None]
    y = y * gamma[None, :, None, None] + beta[None, :, None, None]
    return jnp.maximum(y, 0.0)


if __name__ == "__main__":
    # Small shapes consistent with the module: BasicConv2d(4, 8, kernel_size=3, padding=1)
    N, Cin, H, W = 2, 4, 16, 16
    Cout, K = 8, 3

    key = jax.random.PRNGKey(0)
    k_x, k_w, k_g, k_b, k_m, k_v = jax.random.split(key, 6)

    x = jax.random.normal(k_x, (N, Cin, H, W), dtype=jnp.float32)
    weight = jax.random.normal(k_w, (Cout, Cin, K, K), dtype=jnp.float32) * 0.1
    gamma = jax.random.uniform(k_g, (Cout,), minval=0.5, maxval=1.5, dtype=jnp.float32)
    beta = jax.random.normal(k_b, (Cout,), dtype=jnp.float32) * 0.1
    running_mean = jax.random.normal(k_m, (Cout,), dtype=jnp.float32) * 0.05
    running_var = jax.random.uniform(k_v, (Cout,), minval=0.5, maxval=1.5, dtype=jnp.float32)

    # (stride, padding, dilation, tile_h): auto tile; forced H-tiling with halo; dilated conv.
    configs = [(1, 1, 1, None), (1, 1, 1, 8), (1, 2, 2, None)]
    for (stride, padding, dilation, tile_h) in configs:
        out = basic_conv2d(x, weight, gamma, beta, running_mean, running_var,
                           stride=stride, padding=padding, dilation=dilation,
                           tile_h=tile_h)
        out = jax.block_until_ready(out)
        ref = _reference(x, weight, gamma, beta, running_mean, running_var,
                         stride=stride, padding=padding, dilation=dilation)
        ref = np.asarray(jax.block_until_ready(ref))
        assert out.shape == ref.shape, (out.shape, ref.shape)
        # bf16 activations/weights/output with f32 MXU accumulation -> loose tolerance.
        np.testing.assert_allclose(np.asarray(out.astype(jnp.float32)), ref,
                                   rtol=2e-2, atol=3e-2)
    print("KERNEL_OK")
</pallas_src>

<mosaic_0001>
module attributes {stable_mosaic.version = 11 : i64} {
  func.func @_conv_bn_relu_kernel(%arg0: i32, %arg1: i32, %arg2: memref<1x1x18x72xbf16, #tpu.memory_space<vmem>>, %arg3: memref<36x8xbf16, #tpu.memory_space<vmem>>, %arg4: memref<1x128xf32, #tpu.memory_space<vmem>>, %arg5: memref<1x1x16x128xbf16, #tpu.memory_space<vmem>>) attributes {dimension_semantics = [#tpu.dimension_semantics<parallel>, #tpu.dimension_semantics<parallel>], iteration_bounds = array<i64: 2, 1>, scalar_prefetch = 0 : i64, scratch_operands = 0 : i64, tpu.core_type = #tpu.core_type<tc>, window_params = [{transform_indices = @transform_0, window_bounds = array<i64: 1, 1, 18, 72>}, {pipeline_mode = #tpu.pipeline_mode<synchronous>, transform_indices = @transform_1, window_bounds = array<i64: 36, 8>}, {pipeline_mode = #tpu.pipeline_mode<synchronous>, transform_indices = @transform_2, window_bounds = array<i64: 1, 128>}, {transform_indices = @transform_3, window_bounds = array<i64: 1, 1, 16, 128>}]} {
    %c0 = arith.constant 0 : index
    %c0_0 = arith.constant 0 : index
    %c0_1 = arith.constant 0 : index
    %c0_2 = arith.constant 0 : index
    %0 = vector.load %arg2[%c0, %c0_0, %c0_1, %c0_2] : memref<1x1x18x72xbf16, #tpu.memory_space<vmem>>, vector<1x1x18x72xbf16>
    %1 = vector.shape_cast %0 : vector<1x1x18x72xbf16> to vector<18x72xbf16>
    %2 = vector.extract_strided_slice %1 {offsets = [0, 0], sizes = [16, 72], strides = [1, 1]} : vector<18x72xbf16> to vector<16x72xbf16>
    %3 = vector.extract_strided_slice %2 {offsets = [0, 0], sizes = [16, 12], strides = [1, 1]} : vector<16x72xbf16> to vector<16x12xbf16>
    %4 = vector.extract_strided_slice %2 {offsets = [0, 4], sizes = [16, 12], strides = [1, 1]} : vector<16x72xbf16> to vector<16x12xbf16>
    %5 = vector.extract_strided_slice %2 {offsets = [0, 8], sizes = [16, 12], strides = [1, 1]} : vector<16x72xbf16> to vector<16x12xbf16>
    %6 = vector.extract_strided_slice %2 {offsets = [0, 12], sizes = [16, 12], strides = [1, 1]} : vector<16x72xbf16> to vector<16x12xbf16>
    %7 = vector.extract_strided_slice %2 {offsets = [0, 16], sizes = [16, 12], strides = [1, 1]} : vector<16x72xbf16> to vector<16x12xbf16>
    %8 = vector.extract_strided_slice %2 {offsets = [0, 20], sizes = [16, 12], strides = [1, 1]} : vector<16x72xbf16> to vector<16x12xbf16>
    %9 = vector.extract_strided_slice %2 {offsets = [0, 24], sizes = [16, 12], strides = [1, 1]} : vector<16x72xbf16> to vector<16x12xbf16>
    %10 = vector.extract_strided_slice %2 {offsets = [0, 28], sizes = [16, 12], strides = [1, 1]} : vector<16x72xbf16> to vector<16x12xbf16>
    %11 = vector.extract_strided_slice %2 {offsets = [0, 32], sizes = [16, 12], strides = [1, 1]} : vector<16x72xbf16> to vector<16x12xbf16>
    %12 = vector.extract_strided_slice %2 {offsets = [0, 36], sizes = [16, 12], strides = [1, 1]} : vector<16x72xbf16> to vector<16x12xbf16>
    %13 = vector.extract_strided_slice %2 {offsets = [0, 40], sizes = [16, 12], strides = [1, 1]} : vector<16x72xbf16> to vector<16x12xbf16>
    %14 = vector.extract_strided_slice %2 {offsets = [0, 44], sizes = [16, 12], strides = [1, 1]} : vector<16x72xbf16> to vector<16x12xbf16>
    %15 = vector.extract_strided_slice %2 {offsets = [0, 48], sizes = [16, 12], strides = [1, 1]} : vector<16x72xbf16> to vector<16x12xbf16>
    %16 = vector.extract_strided_slice %2 {offsets = [0, 52], sizes = [16, 12], strides = [1, 1]} : vector<16x72xbf16> to vector<16x12xbf16>
    %17 = vector.extract_strided_slice %2 {offsets = [0, 56], sizes = [16, 12], strides = [1, 1]} : vector<16x72xbf16> to vector<16x12xbf16>
    %18 = vector.extract_strided_slice %2 {offsets = [0, 60], sizes = [16, 12], strides = [1, 1]} : vector<16x72xbf16> to vector<16x12xbf16>
    %19 = tpu.concatenate %3, %4, %5, %6, %7, %8, %9, %10, %11, %12, %13, %14, %15, %16, %17, %18 in 0 : vector<16x12xbf16>, vector<16x12xbf16>, vector<16x12xbf16>, vector<16x12xbf16>, vector<16x12xbf16>, vector<16x12xbf16>, vector<16x12xbf16>, vector<16x12xbf16>, vector<16x12xbf16>, vector<16x12xbf16>, vector<16x12xbf16>, vector<16x12xbf16>, vector<16x12xbf16>, vector<16x12xbf16>, vector<16x12xbf16>, vector<16x12xbf16> -> vector<256x12xbf16>
    %20 = vector.extract_strided_slice %1 {offsets = [1, 0], sizes = [16, 72], strides = [1, 1]} : vector<18x72xbf16> to vector<16x72xbf16>
    %21 = vector.extract_strided_slice %20 {offsets = [0, 0], sizes = [16, 12], strides = [1, 1]} : vector<16x72xbf16> to vector<16x12xbf16>
    %22 = vector.extract_strided_slice %20 {offsets = [0, 4], sizes = [16, 12], strides = [1, 1]} : vector<16x72xbf16> to vector<16x12xbf16>
    %23 = vector.extract_strided_slice %20 {offsets = [0, 8], sizes = [16, 12], strides = [1, 1]} : vector<16x72xbf16> to vector<16x12xbf16>
    %24 = vector.extract_strided_slice %20 {offsets = [0, 12], sizes = [16, 12], strides = [1, 1]} : vector<16x72xbf16> to vector<16x12xbf16>
    %25 = vector.extract_strided_slice %20 {offsets = [0, 16], sizes = [16, 12], strides = [1, 1]} : vector<16x72xbf16> to vector<16x12xbf16>
    %26 = vector.extract_strided_slice %20 {offsets = [0, 20], sizes = [16, 12], strides = [1, 1]} : vector<16x72xbf16> to vector<16x12xbf16>
    %27 = vector.extract_strided_slice %20 {offsets = [0, 24], sizes = [16, 12], strides = [1, 1]} : vector<16x72xbf16> to vector<16x12xbf16>
    %28 = vector.extract_strided_slice %20 {offsets = [0, 28], sizes = [16, 12], strides = [1, 1]} : vector<16x72xbf16> to vector<16x12xbf16>
    %29 = vector.extract_strided_slice %20 {offsets = [0, 32], sizes = [16, 12], strides = [1, 1]} : vector<16x72xbf16> to vector<16x12xbf16>
    %30 = vector.extract_strided_slice %20 {offsets = [0, 36], sizes = [16, 12], strides = [1, 1]} : vector<16x72xbf16> to vector<16x12xbf16>
    %31 = vector.extract_strided_slice %20 {offsets = [0, 40], sizes = [16, 12], strides = [1, 1]} : vector<16x72xbf16> to vector<16x12xbf16>
    %32 = vector.extract_strided_slice %20 {offsets = [0, 44], sizes = [16, 12], strides = [1, 1]} : vector<16x72xbf16> to vector<16x12xbf16>
    %33 = vector.extract_strided_slice %20 {offsets = [0, 48], sizes = [16, 12], strides = [1, 1]} : vector<16x72xbf16> to vector<16x12xbf16>
    %34 = vector.extract_strided_slice %20 {offsets = [0, 52], sizes = [16, 12], strides = [1, 1]} : vector<16x72xbf16> to vector<16x12xbf16>
    %35 = vector.extract_strided_slice %20 {offsets = [0, 56], sizes = [16, 12], strides = [1, 1]} : vector<16x72xbf16> to vector<16x12xbf16>
    %36 = vector.extract_strided_slice %20 {offsets = [0, 60], sizes = [16, 12], strides = [1, 1]} : vector<16x72xbf16> to vector<16x12xbf16>
    %37 = tpu.concatenate %21, %22, %23, %24, %25, %26, %27, %28, %29, %30, %31, %32, %33, %34, %35, %36 in 0 : vector<16x12xbf16>, vector<16x12xbf16>, vector<16x12xbf16>, vector<16x12xbf16>, vector<16x12xbf16>, vector<16x12xbf16>, vector<16x12xbf16>, vector<16x12xbf16>, vector<16x12xbf16>, vector<16x12xbf16>, vector<16x12xbf16>, vector<16x12xbf16>, vector<16x12xbf16>, vector<16x12xbf16>, vector<16x12xbf16>, vector<16x12xbf16> -> vector<256x12xbf16>
    %38 = vector.extract_strided_slice %1 {offsets = [2, 0], sizes = [16, 72], strides = [1, 1]} : vector<18x72xbf16> to vector<16x72xbf16>
    %39 = vector.extract_strided_slice %38 {offsets = [0, 0], sizes = [16, 12], strides = [1, 1]} : vector<16x72xbf16> to vector<16x12xbf16>
    %40 = vector.extract_strided_slice %38 {offsets = [0, 4], sizes = [16, 12], strides = [1, 1]} : vector<16x72xbf16> to vector<16x12xbf16>
    %41 = vector.extract_strided_slice %38 {offsets = [0, 8], sizes = [16, 12], strides = [1, 1]} : vector<16x72xbf16> to vector<16x12xbf16>
    %42 = vector.extract_strided_slice %38 {offsets = [0, 12], sizes = [16, 12], strides = [1, 1]} : vector<16x72xbf16> to vector<16x12xbf16>
    %43 = vector.extract_strided_slice %38 {offsets = [0, 16], sizes = [16, 12], strides = [1, 1]} : vector<16x72xbf16> to vector<16x12xbf16>
    %44 = vector.extract_strided_slice %38 {offsets = [0, 20], sizes = [16, 12], strides = [1, 1]} : vector<16x72xbf16> to vector<16x12xbf16>
    %45 = vector.extract_strided_slice %38 {offsets = [0, 24], sizes = [16, 12], strides = [1, 1]} : vector<16x72xbf16> to vector<16x12xbf16>
    %46 = vector.extract_strided_slice %38 {offsets = [0, 28], sizes = [16, 12], strides = [1, 1]} : vector<16x72xbf16> to vector<16x12xbf16>
    %47 = vector.extract_strided_slice %38 {offsets = [0, 32], sizes = [16, 12], strides = [1, 1]} : vector<16x72xbf16> to vector<16x12xbf16>
    %48 = vector.extract_strided_slice %38 {offsets = [0, 36], sizes = [16, 12], strides = [1, 1]} : vector<16x72xbf16> to vector<16x12xbf16>
    %49 = vector.extract_strided_slice %38 {offsets = [0, 40], sizes = [16, 12], strides = [1, 1]} : vector<16x72xbf16> to vector<16x12xbf16>
    %50 = vector.extract_strided_slice %38 {offsets = [0, 44], sizes = [16, 12], strides = [1, 1]} : vector<16x72xbf16> to vector<16x12xbf16>
    %51 = vector.extract_strided_slice %38 {offsets = [0, 48], sizes = [16, 12], strides = [1, 1]} : vector<16x72xbf16> to vector<16x12xbf16>
    %52 = vector.extract_strided_slice %38 {offsets = [0, 52], sizes = [16, 12], strides = [1, 1]} : vector<16x72xbf16> to vector<16x12xbf16>
    %53 = vector.extract_strided_slice %38 {offsets = [0, 56], sizes = [16, 12], strides = [1, 1]} : vector<16x72xbf16> to vector<16x12xbf16>
    %54 = vector.extract_strided_slice %38 {offsets = [0, 60], sizes = [16, 12], strides = [1, 1]} : vector<16x72xbf16> to vector<16x12xbf16>
    %55 = tpu.concatenate %39, %40, %41, %42, %43, %44, %45, %46, %47, %48, %49, %50, %51, %52, %53, %54 in 0 : vector<16x12xbf16>, vector<16x12xbf16>, vector<16x12xbf16>, vector<16x12xbf16>, vector<16x12xbf16>, vector<16x12xbf16>, vector<16x12xbf16>, vector<16x12xbf16>, vector<16x12xbf16>, vector<16x12xbf16>, vector<16x12xbf16>, vector<16x12xbf16>, vector<16x12xbf16>, vector<16x12xbf16>, vector<16x12xbf16>, vector<16x12xbf16> -> vector<256x12xbf16>
    %56 = tpu.concatenate %19, %37, %55 in 1 : vector<256x12xbf16>, vector<256x12xbf16>, vector<256x12xbf16> -> vector<256x36xbf16>
    %c0_3 = arith.constant 0 : index
    %c0_4 = arith.constant 0 : index
    %57 = vector.load %arg3[%c0_3, %c0_4] : memref<36x8xbf16, #tpu.memory_space<vmem>>, vector<36x8xbf16>
    %cst = arith.constant dense<0.000000e+00> : vector<256x8xf32>
    %58 = tpu.matmul %56, %57, %cst {dimension_numbers = #tpu.dot_dimension_numbers<[1], [0], [0], [1], [0, 0, 1, 1], [], []>} : vector<256x36xbf16>, vector<36x8xbf16>, vector<256x8xf32> -> vector<256x8xf32>
    %59 = vector.extract_strided_slice %58 {offsets = [0, 0], sizes = [16, 8], strides = [1, 1]} : vector<256x8xf32> to vector<16x8xf32>
    %60 = vector.extract_strided_slice %58 {offsets = [16, 0], sizes = [16, 8], strides = [1, 1]} : vector<256x8xf32> to vector<16x8xf32>
    %61 = vector.extract_strided_slice %58 {offsets = [32, 0], sizes = [16, 8], strides = [1, 1]} : vector<256x8xf32> to vector<16x8xf32>
    %62 = vector.extract_strided_slice %58 {offsets = [48, 0], sizes = [16, 8], strides = [1, 1]} : vector<256x8xf32> to vector<16x8xf32>
    %63 = vector.extract_strided_slice %58 {offsets = [64, 0], sizes = [16, 8], strides = [1, 1]} : vector<256x8xf32> to vector<16x8xf32>
    %64 = vector.extract_strided_slice %58 {offsets = [80, 0], sizes = [16, 8], strides = [1, 1]} : vector<256x8xf32> to vector<16x8xf32>
    %65 = vector.extract_strided_slice %58 {offsets = [96, 0], sizes = [16, 8], strides = [1, 1]} : vector<256x8xf32> to vector<16x8xf32>
    %66 = vector.extract_strided_slice %58 {offsets = [112, 0], sizes = [16, 8], strides = [1, 1]} : vector<256x8xf32> to vector<16x8xf32>
    %67 = vector.extract_strided_slice %58 {offsets = [128, 0], sizes = [16, 8], strides = [1, 1]} : vector<256x8xf32> to vector<16x8xf32>
    %68 = vector.extract_strided_slice %58 {offsets = [144, 0], sizes = [16, 8], strides = [1, 1]} : vector<256x8xf32> to vector<16x8xf32>
    %69 = vector.extract_strided_slice %58 {offsets = [160, 0], sizes = [16, 8], strides = [1, 1]} : vector<256x8xf32> to vector<16x8xf32>
    %70 = vector.extract_strided_slice %58 {offsets = [176, 0], sizes = [16, 8], strides = [1, 1]} : vector<256x8xf32> to vector<16x8xf32>
    %71 = vector.extract_strided_slice %58 {offsets = [192, 0], sizes = [16, 8], strides = [1, 1]} : vector<256x8xf32> to vector<16x8xf32>
    %72 = vector.extract_strided_slice %58 {offsets = [208, 0], sizes = [16, 8], strides = [1, 1]} : vector<256x8xf32> to vector<16x8xf32>
    %73 = vector.extract_strided_slice %58 {offsets = [224, 0], sizes = [16, 8], strides = [1, 1]} : vector<256x8xf32> to vector<16x8xf32>
    %74 = vector.extract_strided_slice %58 {offsets = [240, 0], sizes = [16, 8], strides = [1, 1]} : vector<256x8xf32> to vector<16x8xf32>
    %75 = tpu.concatenate %59, %60, %61, %62, %63, %64, %65, %66, %67, %68, %69, %70, %71, %72, %73, %74 in 1 : vector<16x8xf32>, vector<16x8xf32>, vector<16x8xf32>, vector<16x8xf32>, vector<16x8xf32>, vector<16x8xf32>, vector<16x8xf32>, vector<16x8xf32>, vector<16x8xf32>, vector<16x8xf32>, vector<16x8xf32>, vector<16x8xf32>, vector<16x8xf32>, vector<16x8xf32>, vector<16x8xf32>, vector<16x8xf32> -> vector<16x128xf32>
    %c0_5 = arith.constant 0 : index
    %c0_6 = arith.constant 0 : index
    %76 = vector.load %arg4[%c0_5, %c0_6] : memref<1x128xf32, #tpu.memory_space<vmem>>, vector<1x128xf32>
    %77 = vector.broadcast %76 : vector<1x128xf32> to vector<16x128xf32>
    %78 = arith.addf %75, %77 : vector<16x128xf32>
    %cst_7 = arith.constant 0.000000e+00 : f32
    %79 = vector.broadcast %cst_7 : f32 to vector<16x128xf32>
    %80 = arith.maximumf %78, %79 : vector<16x128xf32>
    %81 = arith.truncf %80 : vector<16x128xf32> to vector<16x128xbf16>
    %c0_8 = arith.constant 0 : index
    %c0_9 = arith.constant 0 : index
    %c0_10 = arith.constant 0 : index
    %c0_11 = arith.constant 0 : index
    %82 = vector.load %arg5[%c0_8, %c0_9, %c0_10, %c0_11] : memref<1x1x16x128xbf16, #tpu.memory_space<vmem>>, vector<1x1x16x128xbf16>
    %83 = vector.shape_cast %82 : vector<1x1x16x128xbf16> to vector<16x128xbf16>
    %84 = vector.shape_cast %81 : vector<16x128xbf16> to vector<1x1x16x128xbf16>
    tpu.vector_store %arg5[%c0_8, %c0_9, %c0_10, %c0_11], %84 {strides = array<i32>} : memref<1x1x16x128xbf16, #tpu.memory_space<vmem>>, vector<1x1x16x128xbf16>,
    return
  }
  func.func @transform_0(%arg0: i32, %arg1: i32) -> (i32, i32, i32, i32) {
    %c0_i32 = arith.constant 0 : i32
    %c0_i32_0 = arith.constant 0 : i32
    %c0_i32_1 = arith.constant 0 : i32
    return %arg0, %arg1, %c0_i32, %c0_i32_0 : i32, i32, i32, i32
  }
  func.func @transform_1(%arg0: i32, %arg1: i32) -> (i32, i32) {
    %c0_i32 = arith.constant 0 : i32
    %c0_i32_0 = arith.constant 0 : i32
    %c0_i32_1 = arith.constant 0 : i32
    return %c0_i32, %c0_i32_0 : i32, i32
  }
  func.func @transform_2(%arg0: i32, %arg1: i32) -> (i32, i32) {
    %c0_i32 = arith.constant 0 : i32
    %c0_i32_0 = arith.constant 0 : i32
    %c0_i32_1 = arith.constant 0 : i32
    return %c0_i32, %c0_i32_0 : i32, i32
  }
  func.func @transform_3(%arg0: i32, %arg1: i32) -> (i32, i32, i32, i32) {
    %c0_i32 = arith.constant 0 : i32
    %c0_i32_0 = arith.constant 0 : i32
    %c0_i32_1 = arith.constant 0 : i32
    return %arg0, %arg1, %c0_i32, %c0_i32_0 : i32, i32, i32, i32
  }
}

</mosaic_0001>

<bundles_post_ra>
// kernel: tpu_custom_call.1
= control target key start
LH: loop header
LB: loop body
LE: loop exit
PB: predicated region body
PF: predicated region fallthrough
CT: control target
= control target key end

     0   :  { %8 = vsyncpa [#allocation3], 0  ;;  %s1596_s0 = inlined_call_operand.vmem [shape: bf16[2,1,18,72], index: 0, kind: input, shape index: {}]   ;;  %s1597_s1 = inlined_call_operand.vmem [shape: bf16[36,8], index: 1, kind: input, shape index: {}]   ;;  %s1598_s2 = inlined_call_operand.vmem [shape: f32[1,128], index: 2, kind: input, shape index: {}]   ;;  %s1599_s3 = inlined_call_operand.hbm [shape: bf16[2,1,16,128], index: 3, kind: output, shape index: {}]  }
   0x1   :  { %10 = vsyncpa [#allocation3 + $0x1], 0  ;;  %s1281_s12 = smov 0   ;;  %s1283_s13 = smov 0  }
   0x2   :  { %s1285_s14 = smov 0   ;;  %s1287_s15 = smov 0  }
   0x3   :  { %s1289_s16 = smov 0   ;;  %s1291_s17 = smov 0  }
   0x4 LB: > { %s962_s18 = sadd.s32 4294967295, %s1233_s17   ;;  %s963_s19 = sadd.s32 4294967294, %s1233_s17   ;;  %s1233_s17 = sphi %s1291_s17, %s16_s17   ;;  %s1229_s16 = sphi %s1289_s16, %s1606_s16   ;;  %s1225_s15 = sphi %s1287_s15, %s1605_s15   ;;  %s1221_s14 = sphi %s1285_s14, %s1604_s14   ;;  %s1217_s13 = sphi %s1283_s13, %s1603_s13   ;;  %s1213_s12 = sphi %s1281_s12, %s1602_s12  }
   0x5   : > { %s28_s20 = sadd.s32 1, %s1229_s16  ;;  %s107_s21 = sadd.s32 1, %s1221_s14 }
   0x6   : > { %p30_p0 = scmp.ge.s32.totalorder %s28_s20, 2  ;;  %p117_p1 = scmp.ne.s32.totalorder %s1221_s14, %s1217_s13 }
   0x7   : > { %p118_p2 = scmp.eq.s32.totalorder %s962_s18, 1  ;;  %p123_p3 = scmp.ne.s32.totalorder %s1217_s13, %s1213_s12 }
   0x8   : > { %s1608_s20 = smov (%p30_p0, %s28_s20), 0  ;;  %p124_p5 = scmp.eq.s32.totalorder %s963_s19, 1 }
   0x9   : > { %p1321_p4 = por %p118_p2, %p117_p1  ;;  %s102_s23 = ssub.s32 %s1229_s16, %s1608_s20 }
   0xa   : > { %p966_p6 = scmp.ge.s32.totalorder %s1233_s17, 1  ;;  %p105_p7 = scmp.eq.s32.totalorder %s102_s23, 0 }
   0xb   : > { %p1328_p8 = por %p124_p5, %p123_p3  ;;  %p160_p9 = scmp.lt.s32.totalorder %s1233_s17, 3 }
   0xc   : > { %s1334_s25 = scalar_select %p105_p7, %s1221_s14, %s107_s21  }
   0xd   : > { %p161_p10 = pnand %p966_p6, %p160_p9 }
   0xe   : > { %p188_p11 = scmp.lt.s32.totalorder (!%p161_p10), %s1225_s15, 1  ;;  %s1235_s4 = smov (!%p161_p10), 96  }
   0xf   : > { %164 = sbr.rel (%p161_p10) target bundleno = 690 (0x2b2), region = 32  ;;  %s1236_s5 = smov (!%p161_p10), 124  }
  0x10   : > { %s1237_s6 = smov (!%p161_p10), 92   ;;  %s1238_s7 = smov (!%p161_p10), 120  }
  0x11   : > { %s1239_s8 = smov (!%p161_p10), 116   ;;  %s1240_s9 = smov (!%p161_p10), 88  }
  0x12   : > { %s1241_s10 = smov (!%p161_p10), 112   ;;  %s1242_s11 = smov (!%p161_p10), 84  }
  0x13   : > { %s1243_s18 = smov (!%p161_p10), 108   ;;  %s1244_s19 = smov (!%p161_p10), 104  }
  0x14   : > { %s189_s26 = scalar_select %p188_p11, %s1225_s15, 1  ;;  %vm282_vm0 = vcmask 1046528   ;;  %vm239_vm1 = vsmask.f32 7424  ;;  %vm514_vm2 = vcmask 1041408   ;;  %v1155_v22 = vld [vmem:[%s1597_s1 + $0x8] sm:$0xff]  }
  0x15   : > { %s1245_s21 = smov 80   ;;  %s1246_s23 = smov 100   ;;  %v1154_v12 = vld [vmem:[%s1597_s1 + $0x10] ss:$0 sps:$4 sm:$0x33]   ;;  %v1156_v25 = vld [vmem:[%s1597_s1] sm:$0xff]  }
  0x16   : > { %s1071_s27 = smul.u32 12, %s189_s26  ;;  %s1247_s26 = smov 76   ;;  %1069 = vmatprep.subr.msk.bf16.mxu0 %vm514_vm2, %v1154_v12  ;;  %v516_v13 = vsel %vm514_vm2, %v1154_v12, 0  ;;  %1070 = vmatprep.subr.msk.bf16.mxu1 %vm514_vm2, %v1154_v12  ;;  %vm380_vm3 = vcmask 97280   ;;  %vm428_vm4 = vcmask 195584   ;;  %vm481_vm5 = vcmask 293888  }
  0x17   : > { %s1249_s28 = smov 68   ;;  %s1250_s29 = smov 12   ;;  %1026 = vmatpush3.bf16.msra.mxu0 %v516_v13  ;;  %1066 = vmatpush3.bf16.msra.mxu1 %v516_v13  ;;  %vm799_vm6 = vcmask 64512   ;;  %vm802_vm7 = vcmask 130048   ;;  %vm807_vm8 = vcmask 261120   ;;  %vm810_vm9 = vcmask 326656  }
  0x18   : > { %s196_s30 = scalar_lea.vmem %s1596_s0, %s1071_s27  ;;  %s1248_s27 = smov 72   ;;  %1027 = vmatprep.subr.bf16.mxu0 %v1155_v22  ;;  %1064 = vmatprep.subr.bf16.mxu1 %v1155_v22  ;;  %vm813_vm10 = vcmask 392192   ;;  %vm816_vm11 = vcmask 457728   ;;  %vm819_vm12 = vcmask 523264   ;;  %vm822_vm13 = vcmask 588800  }
  0x19   : > { %v1341_v0 = vld [vmem:[%s196_s30] sm:$0xff]   ;;  %v1153_v1 = vld [vmem:[%s196_s30 + $0x8] ss:$0 sps:$4 sm:$0x11]   ;;  %s1251_s30 = smov 24   ;;  %vm825_vm14 = vcmask 654336  }
  0x1a   : > { %v283_v2 = vrot.slane %v1341_v0, 1  ;;  %v284_v3 = vrot.slane %v1153_v1, 1  ;;  %v241_v4 = vshrl.u32 %v1341_v0, 16  ;;  %v243_v5 = vshll.u32 %v1341_v0, 16 }
  0x1b   : > { %v248_v6 = vshll.u32 %v1153_v1, 16  ;;  %1028 = vmatpush3.bf16.msra.mxu0 %v1155_v22  ;;  %1067 = vmatpush3.bf16.msra.mxu1 %v1155_v22  ;;  %vm828_vm15 = vcmask 719872   ;;  %vm837_vm2 = vcmask 916480  }
  0x1c   : > { %v285_v7 = vsel %vm282_vm0, %v283_v2, %v284_v3  ;;  %v245_v8 = vrot.slane %v243_v5, 1  ;;  %1029 = vmatprep.subr.bf16.mxu0 %v1156_v25  ;;  %1065 = vmatprep.subr.bf16.mxu1 %v1156_v25  ;;  %vm831_vm0 = vcmask 785408  }
  0x1d   : > { %300 = vrot.lane.b32.xlu1 %v285_v7, %s1235_s4  ;;  %286 = vrot.lane.b32.xlu0 %v285_v7, %s1236_s5  ;;  %v250_v10 = vrot.slane %v248_v6, 1 }
  0x1e   : > { %v246_v9 = vor.u32 %v245_v8, %v241_v4 }
  0x1f   : > { %1030 = vmatpush3.bf16.msra.mxu0 %v1156_v25  ;;  %1068 = vmatpush3.bf16.msra.mxu1 %v1156_v25 }
  0x20   : > { %v251_v11 = vsel %vm239_vm1, %v246_v9, %v250_v10  ;;  %vm834_vm1 = vcmask 850944  }
  0x21   : > { %302 = vrot.lane.b32.xlu1 %v285_v7, %s1237_s6  ;;  %288 = vrot.lane.b32.xlu0 %v285_v7, %s1238_s7 }
  0x25   : > { %290 = vrot.lane.b32.xlu0 %v285_v7, %s1239_s8  ;;  %254 = vrot.lane.b32.xlu1 %v251_v11, %s1238_s7 }
  0x29   : > { %266 = vrot.lane.b32.xlu1 %v251_v11, %s1235_s4  ;;  %252 = vrot.lane.b32.xlu0 %v251_v11, %s1236_s5 }
  0x2d   : > { %268 = vrot.lane.b32.xlu1 %v251_v11, %s1237_s6  ;;  %256 = vrot.lane.b32.xlu0 %v251_v11, %s1239_s8 }
  0x31   : > { %270 = vrot.lane.b32.xlu1 %v251_v11, %s1240_s9  ;;  %258 = vrot.lane.b32.xlu0 %v251_v11, %s1241_s10 }
  0x35   : > { %272 = vrot.lane.b32.xlu1 %v251_v11, %s1242_s11  ;;  %260 = vrot.lane.b32.xlu0 %v251_v11, %s1243_s18 }
  0x39   : > { %304 = vrot.lane.b32.xlu1 %v285_v7, %s1240_s9  ;;  %292 = vrot.lane.b32.xlu0 %v285_v7, %s1241_s10 }
  0x3d   : > { %306 = vrot.lane.b32.xlu1 %v285_v7, %s1242_s11  ;;  %294 = vrot.lane.b32.xlu0 %v285_v7, %s1243_s18 }
  0x41   : > { %262 = vrot.lane.b32.xlu0 %v251_v11, %s1244_s19  ;;  %274 = vrot.lane.b32.xlu1 %v251_v11, %s1245_s21 }
  0x45   : > { %264 = vrot.lane.b32.xlu0 %v251_v11, %s1246_s23  ;;  %276 = vrot.lane.b32.xlu1 %v251_v11, %s1247_s26 }
  0x49   : > { %296 = vrot.lane.b32.xlu0 %v285_v7, %s1244_s19  ;;  %308 = vrot.lane.b32.xlu1 %v285_v7, %s1245_s21 }
  0x4d   : > { %310 = vrot.lane.b32.xlu1 %v285_v7, %s1247_s26  ;;  %298 = vrot.lane.b32.xlu0 %v285_v7, %s1246_s23 }
  0x51   : > { %278 = vrot.lane.b32.xlu0 %v251_v11, %s1248_s27  ;;  %280 = vrot.lane.b32.xlu1 %v251_v11, %s1249_s28 }
  0x55   : > { %314 = vrot.lane.b32.xlu1 %v285_v7, %s1249_s28  ;;  %312 = vrot.lane.b32.xlu0 %v285_v7, %s1248_s27 }
  0x59   : > { %206 = vrot.lane.b32.xlu1 %v1341_v0, %s1236_s5  ;;  %316 = vrot.lane.b32.xlu0 %v251_v11, %s1250_s29  ;;  %s1000_s5 = sshll.u32 %s1225_s15, 7  ;;  %s1259_s15 = smov [#allocation2]  }
  0x5d   : > { %348 = vrot.lane.b32.xlu1 %v285_v7, %s1251_s30  ;;  %220 = vrot.lane.b32.xlu0 %v1341_v0, %s1235_s4 }
  0x61   : > { %208 = vrot.lane.b32.xlu1 %v1341_v0, %s1238_s7  ;;  %222 = vrot.lane.b32.xlu0 %v1341_v0, %s1237_s6 }
  0x65   : > { %210 = vrot.lane.b32.xlu1 %v1341_v0, %s1239_s8  ;;  %224 = vrot.lane.b32.xlu0 %v1341_v0, %s1240_s9 }
  0x69   : > { %212 = vrot.lane.b32.xlu1 %v1341_v0, %s1241_s10  ;;  %226 = vrot.lane.b32.xlu0 %v1341_v0, %s1242_s11 }
  0x6d   : > { %214 = vrot.lane.b32.xlu1 %v1341_v0, %s1243_s18  ;;  %228 = vrot.lane.b32.xlu0 %v1341_v0, %s1245_s21 }
  0x71   : > { %216 = vrot.lane.b32.xlu1 %v1341_v0, %s1244_s19  ;;  %230 = vrot.lane.b32.xlu0 %v1341_v0, %s1247_s26  ;;  %s1252_s26 = smov 8  }
  0x75   : > { %218 = vrot.lane.b32.xlu1 %v1341_v0, %s1246_s23  ;;  %s1545_s23 = scalar_lea.hbm %s1599_s3, %s1000_s5 }
  0x8f   : > { %v301_v14 = vpop.permute.xlu1 %300  ;;  %v287_v15 = vpop.permute.xlu0 %286 }
  0x90   : > { %350 = vrot.lane.b32.xlu0 %v287_v15, %s1251_s30 }
  0x93   : > { %v303_v16 = vpop.permute.xlu1 %302  ;;  %v289_v17 = vpop.permute.xlu0 %288 }
  0x94   : > { %352 = vrot.lane.b32.xlu1 %v289_v17, %s1251_s30  ;;  %364 = vrot.lane.b32.xlu0 %v301_v14, %s1251_s30 }
  0x97   : > { %v291_v18 = vpop.permute.xlu0 %290  ;;  %v255_v19 = vpop.permute.xlu1 %254 }
  0x98   : > { %354 = vrot.lane.b32.xlu1 %v291_v18, %s1251_s30  ;;  %366 = vrot.lane.b32.xlu0 %v303_v16, %s1251_s30 }
  0x9b   : > { %v267_v20 = vpop.permute.xlu1 %266  ;;  %v253_v21 = vpop.permute.xlu0 %252 }
  0x9f   : > { %v269_v23 = vpop.permute.xlu1 %268  ;;  %v257_v24 = vpop.permute.xlu0 %256 }
  0xa3   : > { %v271_v26 = vpop.permute.xlu1 %270  ;;  %v259_v27 = vpop.permute.xlu0 %258 }
  0xa7   : > { %v273_v28 = vpop.permute.xlu1 %272  ;;  %v261_v29 = vpop.permute.xlu0 %260 }
  0xab   : > { %v305_v30 = vpop.permute.xlu1 %304  ;;  %v293_v31 = vpop.permute.xlu0 %292 }
  0xac   : > { %368 = vrot.lane.b32.xlu0 %v305_v30, %s1251_s30  ;;  %356 = vrot.lane.b32.xlu1 %v293_v31, %s1251_s30 }
  0xaf   : > { %v307_v32 = vpop.permute.xlu1 %306  ;;  %v295_v33 = vpop.permute.xlu0 %294 }
  0xb0   : > { %370 = vrot.lane.b32.xlu0 %v307_v32, %s1251_s30  ;;  %358 = vrot.lane.b32.xlu1 %v295_v33, %s1251_s30 }
  0xb3   : > { %v263_v34 = vpop.permute.xlu0 %262  ;;  %v275_v35 = vpop.permute.xlu1 %274 }
  0xb4   : > { %318 = vrot.lane.b32.xlu0 %v253_v21, %s1250_s29 }
  0xb7   : > { %v265_v36 = vpop.permute.xlu0 %264  ;;  %v277_v37 = vpop.permute.xlu1 %276 }
  0xb8   : > { %332 = vrot.lane.b32.xlu0 %v267_v20, %s1250_s29 }
  0xbb   : > { %v297_v38 = vpop.permute.xlu0 %296  ;;  %v309_v39 = vpop.permute.xlu1 %308 }
  0xbc   : > { %334 = vrot.lane.b32.xlu0 %v269_v23, %s1250_s29  ;;  %360 = vrot.lane.b32.xlu1 %v297_v38, %s1251_s30 }
  0xbf   : > { %v311_v40 = vpop.permute.xlu1 %310  ;;  %v299_v41 = vpop.permute.xlu0 %298 }
  0xc0   : > { %336 = vrot.lane.b32.xlu0 %v271_v26, %s1250_s29  ;;  %320 = vrot.lane.b32.xlu1 %v255_v19, %s1250_s29 }
  0xc3   : > { %v279_v42 = vpop.permute.xlu0 %278  ;;  %v281_v43 = vpop.permute.xlu1 %280 }
  0xc4   : > { %338 = vrot.lane.b32.xlu0 %v273_v28, %s1250_s29  ;;  %322 = vrot.lane.b32.xlu1 %v257_v24, %s1250_s29 }
  0xc7   : > { %v315_v44 = vpop.permute.xlu1 %314  ;;  %v313_v45 = vpop.permute.xlu0 %312 }
  0xc8   : > { %340 = vrot.lane.b32.xlu0 %v275_v35, %s1250_s29  ;;  %324 = vrot.lane.b32.xlu1 %v259_v27, %s1250_s29 }
  0xcb   : > { %v207_v46 = vpop.permute.xlu1 %206  ;;  %v317_v47 = vpop.permute.xlu0 %316 }
  0xcc   : > { %342 = vrot.lane.b32.xlu0 %v277_v37, %s1250_s29  ;;  %326 = vrot.lane.b32.xlu1 %v261_v29, %s1250_s29  ;;  %v382_v48 = vsel %vm380_vm3, %v1341_v0, %v317_v47 }
  0xcf   : > { %v349_v49 = vpop.permute.xlu1 %348  ;;  %v221_v51 = vpop.permute.xlu0 %220 }
  0xd0   : > { %372 = vrot.lane.b32.xlu0 %v309_v39, %s1251_s30  ;;  %328 = vrot.lane.b32.xlu1 %v263_v34, %s1250_s29  ;;  %v430_v50 = vsel %vm428_vm4, %v382_v48, %v349_v49 }
  0xd1   : > { %1031 = vmatprep.mubr.msk.bf16.mxu0 %vm481_vm5, %v430_v50 }
  0xd3   : > { %v223_v52 = vpop.permute.xlu0 %222  ;;  %v209_v53 = vpop.permute.xlu1 %208 }
  0xd4   : > { %374 = vrot.lane.b32.xlu0 %v311_v40, %s1251_s30  ;;  %330 = vrot.lane.b32.xlu1 %v265_v36, %s1250_s29 }
  0xd7   : > { %v225_v54 = vpop.permute.xlu0 %224  ;;  %v211_v55 = vpop.permute.xlu1 %210 }
  0xd8   : > { %362 = vrot.lane.b32.xlu1 %v299_v41, %s1251_s30  ;;  %344 = vrot.lane.b32.xlu0 %v279_v42, %s1250_s29 }
  0xdb   : > { %v227_v56 = vpop.permute.xlu0 %226  ;;  %v213_v57 = vpop.permute.xlu1 %212 }
  0xdc   : > { %232 = vrot.lane.b32.xlu1 %v1341_v0, %s1248_s27  ;;  %346 = vrot.lane.b32.xlu0 %v281_v43, %s1250_s29  ;;  %s1254_s29 = smov 16  }
  0xdf   : > { %v229_v58 = vpop.permute.xlu0 %228  ;;  %v215_v59 = vpop.permute.xlu1 %214 }
  0xe0   : > { %234 = vrot.lane.b32.xlu1 %v1341_v0, %s1249_s28  ;;  %378 = vrot.lane.b32.xlu0 %v315_v44, %s1251_s30  ;;  %s1253_s28 = smov 64  }
  0xe3   : > { %v231_v60 = vpop.permute.xlu0 %230  ;;  %v217_v61 = vpop.permute.xlu1 %216 }
  0xe4   : > { %376 = vrot.lane.b32.xlu1 %v313_v45, %s1251_s30 }
  0xe7   : > { %v219_v63 = vpop.permute.xlu1 %218 }
 0x102   : > { %v351_v62 = vpop.permute.xlu0 %350 }
 0x106   : > { %v365_v1 = vpop.permute.xlu0 %364  ;;  %v353_v2 = vpop.permute.xlu1 %352 }
 0x10a   : > { %v367_v0 = vpop.permute.xlu0 %366  ;;  %v355_v4 = vpop.permute.xlu1 %354 }
 0x11e   : > { %v369_v3 = vpop.permute.xlu0 %368  ;;  %v357_v6 = vpop.permute.xlu1 %356 }
 0x122   : > { %v371_v5 = vpop.permute.xlu0 %370  ;;  %v359_v10 = vpop.permute.xlu1 %358 }
 0x126   : > { %v319_v7 = vpop.permute.xlu0 %318 }
 0x127   : > { %v385_v8 = vsel %vm380_vm3, %v207_v46, %v319_v7 }
 0x128   : > { %v432_v9 = vsel %vm428_vm4, %v385_v8, %v351_v62 }
 0x129   : > { %1032 = vmatmul.mubr.msk.bf16.vlgmr.msra.gmra.mxu0 %vm481_vm5, %v432_v9 }
 0x12a   : > { %v333_v11 = vpop.permute.xlu0 %332 }
 0x12b   : > { %v406_v12 = vsel %vm380_vm3, %v221_v51, %v333_v11 }
 0x12c   : > { %v446_v13 = vsel %vm428_vm4, %v406_v12, %v365_v1 }
 0x12d   : > { %1047 = vmatprep.mubr.msk.bf16.mxu1 %vm481_vm5, %v446_v13 }
 0x12e   : > { %v361_v14 = vpop.permute.xlu1 %360  ;;  %v335_v15 = vpop.permute.xlu0 %334 }
 0x12f   : > { %v409_v16 = vsel %vm380_vm3, %v223_v52, %v335_v15 }
 0x130   : > { %v448_v17 = vsel %vm428_vm4, %v409_v16, %v367_v0 }
 0x131   : > { %1048 = vmatmul.mubr.msk.bf16.vlgmr.msra.gmra.mxu1 %vm481_vm5, %v448_v17 }
 0x132   : > { %v321_v18 = vpop.permute.xlu1 %320  ;;  %v337_v19 = vpop.permute.xlu0 %336 }
 0x133   : > { %v388_v20 = vsel %vm380_vm3, %v209_v53, %v321_v18  ;;  %v412_v21 = vsel %vm380_vm3, %v225_v54, %v337_v19 }
 0x134   : > { %v434_v22 = vsel %vm428_vm4, %v388_v20, %v353_v2  ;;  %v450_v23 = vsel %vm428_vm4, %v412_v21, %v369_v3 }
 0x135   : > { %1035 = vmatprep.mubr.msk.bf16.mxu0 %vm481_vm5, %v434_v22  ;;  %1051 = vmatprep.mubr.msk.bf16.mxu1 %vm481_vm5, %v450_v23 }
 0x136   : > { %v323_v24 = vpop.permute.xlu1 %322  ;;  %v339_v25 = vpop.permute.xlu0 %338 }
 0x137   : > { %v391_v26 = vsel %vm380_vm3, %v211_v55, %v323_v24  ;;  %v415_v27 = vsel %vm380_vm3, %v227_v56, %v339_v25 }
 0x138   : > { %v436_v28 = vsel %vm428_vm4, %v391_v26, %v355_v4  ;;  %v452_v29 = vsel %vm428_vm4, %v415_v27, %v371_v5 }
 0x139   : > { %1036 = vmatmul.mubr.msk.bf16.gmra.mxu0 %vm481_vm5, %v436_v28  ;;  %1052 = vmatmul.mubr.msk.bf16.gmra.mxu1 %vm481_vm5, %v452_v29 }
 0x13a   : > { %v325_v30 = vpop.permute.xlu1 %324  ;;  %v341_v31 = vpop.permute.xlu0 %340 }
 0x13b   : > { %v394_v32 = vsel %vm380_vm3, %v213_v57, %v325_v30  ;;  %v418_v38 = vsel %vm380_vm3, %v229_v58, %v341_v31 }
 0x13c   : > { %v438_v33 = vsel %vm428_vm4, %v394_v32, %v357_v6 }
 0x13d   : > { %1039 = vmatprep.mubr.msk.bf16.mxu0 %vm481_vm5, %v438_v33 }
 0x13e   : > { %v327_v34 = vpop.permute.xlu1 %326  ;;  %v343_v35 = vpop.permute.xlu0 %342 }
 0x13f   : > { %v397_v36 = vsel %vm380_vm3, %v215_v59, %v327_v34  ;;  %v421_v44 = vsel %vm380_vm3, %v231_v60, %v343_v35 }
 0x140   : > { %v440_v37 = vsel %vm428_vm4, %v397_v36, %v359_v10 }
 0x141   : > { %1040 = vmatmul.mubr.msk.bf16.gmra.mxu0 %vm481_vm5, %v440_v37 }
 0x142   : > { %v329_v39 = vpop.permute.xlu1 %328  ;;  %v373_v40 = vpop.permute.xlu0 %372 }
 0x143   : > { %v400_v41 = vsel %vm380_vm3, %v217_v61, %v329_v39  ;;  %v454_v42 = vsel %vm428_vm4, %v418_v38, %v373_v40 }
 0x144   : > { %1055 = vmatprep.mubr.msk.bf16.mxu1 %vm481_vm5, %v454_v42  ;;  %v442_v43 = vsel %vm428_vm4, %v400_v41, %v361_v14 }
 0x145   : > { %1043 = vmatprep.mubr.msk.bf16.mxu0 %vm481_vm5, %v442_v43 }
 0x146   : > { %v331_v45 = vpop.permute.xlu1 %330  ;;  %v375_v46 = vpop.permute.xlu0 %374 }
 0x147   : > { %v456_v47 = vsel %vm428_vm4, %v421_v44, %v375_v46  ;;  %v403_v48 = vsel %vm380_vm3, %v219_v63, %v331_v45 }
 0x148   : > { %1056 = vmatmul.mubr.msk.bf16.gmra.mxu1 %vm481_vm5, %v456_v47 }
 0x14a   : > { %v363_v49 = vpop.permute.xlu1 %362  ;;  %v345_v50 = vpop.permute.xlu0 %344 }
 0x14b   : > { %v444_v51 = vsel %vm428_vm4, %v403_v48, %v363_v49 }
 0x14c   : > { %1044 = vmatmul.mubr.msk.bf16.gmra.mxu0 %vm481_vm5, %v444_v51 }
 0x14e   : > { %v233_v52 = vpop.permute.xlu1 %232  ;;  %v347_v53 = vpop.permute.xlu0 %346 }
 0x14f   : > { %v424_v57 = vsel %vm380_vm3, %v233_v52, %v345_v50 }
 0x152   : > { %v235_v54 = vpop.permute.xlu1 %234  ;;  %v379_v56 = vpop.permute.xlu0 %378 }
 0x153   : > { %v427_v55 = vsel %vm380_vm3, %v235_v54, %v347_v53  ;;  %vm840_vm3 = vcmask 982016  }
 0x154   : > { %v460_v59 = vsel %vm428_vm4, %v427_v55, %v379_v56 }
 0x156   : > { %v377_v58 = vpop.permute.xlu1 %376 }
 0x157   : > { %v458_v60 = vsel %vm428_vm4, %v424_v57, %v377_v58 }
 0x158   : > { %1059 = vmatprep.mubr.msk.bf16.mxu1 %vm481_vm5, %v458_v60 }
 0x159   : > { %1060 = vmatmul.mubr.msk.bf16.gmra.mxu1 %vm481_vm5, %v460_v59 }
 0x1e9   : > { %v1033_v61 = vpop.f32.mrf.mxu0 }
 0x1ea   : > { %681 = vrot.lane.b32.xlu1 %v1033_v61, %s1252_s26 }
 0x1eb   : > { %v1493_v62 = vpop.f32.mrf.mxu0 }
 0x1ed   : > { %v1034_v63 = vpop.f32.mrf.mxu0 }
 0x1ee   : > { %683 = vrot.lane.b32.xlu0 %v1034_v63, %s1252_s26 }
 0x1ef   : > { %v1498_v3 = vpop.f32.mrf.mxu0 }
 0x1f1   : > { %v1049_v1 = vpop.f32.mrf.mxu1 }
 0x1f2   : > { %745 = vrot.lane.b32.xlu1 %v1049_v1, %s1248_s27 }
 0x1f3   : > { %v616_v2 = vpop.f32.mrf.mxu1 }
 0x1f5   : > { %v1050_v0 = vpop.f32.mrf.mxu1 }
 0x1f6   : > { %737 = vrot.lane.b32.xlu1 %v616_v2, %s1253_s28  ;;  %747 = vrot.lane.b32.xlu0 %v1050_v0, %s1248_s27  ;;  %s1255_s27 = smov 40  }
 0x1f7   : > { %v619_v4 = vpop.f32.mrf.mxu1 }
 0x1f9   : > { %v1037_v5 = vpop.f32.mrf.mxu0  ;;  %v1053_v6 = vpop.f32.mrf.mxu1 }
 0x1fa   : > { %697 = vrot.lane.b32.xlu1 %v1037_v5, %s1251_s30  ;;  %739 = vrot.lane.b32.xlu0 %v619_v4, %s1253_s28 }
 0x1fb   : > { %v568_v7 = vpop.f32.mrf.mxu0  ;;  %v632_v8 = vpop.f32.mrf.mxu1 }
 0x1fd   : > { %v1038_v9 = vpop.f32.mrf.mxu0  ;;  %v1054_v11 = vpop.f32.mrf.mxu1 }
 0x1fe   : > { %699 = vrot.lane.b32.xlu0 %v1038_v9, %s1251_s30  ;;  %761 = vrot.lane.b32.xlu1 %v1053_v6, %s1240_s9  ;;  %s1256_s30 = smov 32  }
 0x1ff   : > { %v571_v10 = vpop.f32.mrf.mxu0  ;;  %v635_v13 = vpop.f32.mrf.mxu1 }
 0x201   : > { %v1041_v12 = vpop.f32.mrf.mxu0 }
 0x202   : > { %689 = vrot.lane.b32.xlu1 %v568_v7, %s1254_s29  ;;  %763 = vrot.lane.b32.xlu0 %v1054_v11, %s1240_s9  ;;  %s1257_s9 = smov 56  }
 0x203   : > { %v584_v14 = vpop.f32.mrf.mxu0 }
 0x205   : > { %v1042_v16 = vpop.f32.mrf.mxu0 }
 0x206   : > { %753 = vrot.lane.b32.xlu1 %v632_v8, %s1245_s21  ;;  %691 = vrot.lane.b32.xlu0 %v571_v10, %s1254_s29 }
 0x207   : > { %v587_v18 = vpop.f32.mrf.mxu0 }
 0x208   : > { %v1057_v15 = vpop.f32.mrf.mxu1 }
 0x20a   : > { %713 = vrot.lane.b32.xlu1 %v1041_v12, %s1255_s27  ;;  %755 = vrot.lane.b32.xlu0 %v635_v13, %s1245_s21  ;;  %v648_v17 = vpop.f32.mrf.mxu1  ;;  %s1258_s21 = smov 48  }
 0x20c   : > { %v1045_v19 = vpop.f32.mrf.mxu0  ;;  %v1058_v20 = vpop.f32.mrf.mxu1 }
 0x20e   : > { %705 = vrot.lane.b32.xlu1 %v584_v14, %s1256_s30  ;;  %715 = vrot.lane.b32.xlu0 %v1042_v16, %s1255_s27  ;;  %v600_v21 = vpop.f32.mrf.mxu0  ;;  %v651_v22 = vpop.f32.mrf.mxu1  ;;  %s1161_s27 = sshll.u32 %s1259_s15, 4  ;;  %s1162_s27 = int_to_ptr.vmem [resolvable:$false] %s1161_s27 }
 0x210   : > { %v1046_v23 = vpop.f32.mrf.mxu0 }
 0x212   : > { %707 = vrot.lane.b32.xlu0 %v587_v18, %s1256_s30  ;;  %769 = vrot.lane.b32.xlu1 %v648_v17, %s1235_s4  ;;  %v603_v25 = vpop.f32.mrf.mxu0  ;;  %s1163_s30 = scalar_lea.vmem %s1162_s27, 256 }
 0x216   : > { %729 = vrot.lane.b32.xlu1 %v1045_v19, %s1257_s9  ;;  %771 = vrot.lane.b32.xlu0 %v651_v22, %s1235_s4  ;;  %s185_s4 = sand.u32 1, %s1217_s13  }
 0x217   : > { %s1549_s26 = scalar_lea.sflag [#allocation3], %s185_s4 }
 0x219   : > { %v1061_v24 = vpop.f32.mrf.mxu1 }
 0x21a   : > { %721 = vrot.lane.b32.xlu1 %v600_v21, %s1258_s21  ;;  %731 = vrot.lane.b32.xlu0 %v1046_v23, %s1257_s9  ;;  %v990_v21 = vld [vmem:[%s1598_s2] ss:$0 sm:$0xff] }
 0x21b   : > { %v664_v26 = vpop.f32.mrf.mxu1 }
 0x21d   : > { %v1062_v27 = vpop.f32.mrf.mxu1 }
 0x21e   : > { %777 = vrot.lane.b32.xlu1 %v1057_v15, %s1244_s19  ;;  %723 = vrot.lane.b32.xlu0 %v603_v25, %s1258_s21 }
 0x21f   : > { %v667_v28 = vpop.f32.mrf.mxu1 }
 0x222   : > { %779 = vrot.lane.b32.xlu0 %v1058_v20, %s1244_s19  ;;  %785 = vrot.lane.b32.xlu1 %v664_v26, %s1241_s10  ;;  %s967_s19 = sshll.u32 %s185_s4, 3 }
 0x223   : > { %s187_s6 = scalar_lea.vmem [#allocation2], %s967_s19 }
 0x224   : > { %s880_s8 = sshll.u32 %s187_s6, 4  ;;  %s1547_s8 = int_to_ptr.vmem [resolvable:$true] %s880_s8 }
 0x225   : > { %s1157_s29 = scalar_lea.vmem %s1547_s8, 128  ;;  %p1164_p1 = scmp.lt.s32.totalorder %s1547_s8, %s1162_s27 }
 0x226   : > { %793 = vrot.lane.b32.xlu1 %v1061_v24, %s1238_s7  ;;  %787 = vrot.lane.b32.xlu0 %v667_v28, %s1241_s10  ;;  %p1158_p12 = scmp.ne.s32.totalorder %s1547_s8, %s1157_s29  ;;  %p1165_p2 = scmp.lt.s32.totalorder %s1163_s30, %s1157_s29 }
 0x228   : > { %p1159_p13 = pnand %p1158_p12, %p1321_p4  ;;  %p1166_p3 = por %p1165_p2, %p1164_p1 }
 0x22a   : > { %795 = vrot.lane.b32.xlu0 %v1062_v27, %s1238_s7  ;;  %p1160_p0 = pneg %p1159_p13 }
 0x22c   : > { %p1167_p5 = pnand %p1166_p3, %p1160_p0 }
 0x25c   : > { %v682_v29 = vpop.permute.xlu1 %681 }
 0x25d   : > { %v800_v46 = vsel %vm799_vm6, %v1493_v62, %v682_v29 }
 0x260   : > { %v684_v30 = vpop.permute.xlu0 %683 }
 0x261   : > { %v801_v50 = vsel %vm799_vm6, %v1498_v3, %v684_v30 }
 0x264   : > { %v746_v31 = vpop.permute.xlu1 %745 }
 0x268   : > { %v738_v32 = vpop.permute.xlu1 %737  ;;  %v748_v33 = vpop.permute.xlu0 %747 }
 0x26c   : > { %v698_v34 = vpop.permute.xlu1 %697  ;;  %v740_v35 = vpop.permute.xlu0 %739 }
 0x270   : > { %v762_v36 = vpop.permute.xlu1 %761  ;;  %v700_v37 = vpop.permute.xlu0 %699 }
 0x274   : > { %v690_v38 = vpop.permute.xlu1 %689  ;;  %v764_v39 = vpop.permute.xlu0 %763 }
 0x275   : > { %v803_v49 = vsel %vm802_vm7, %v800_v46, %v690_v38 }
 0x276   : > { %v805_v51 = vsel %vm428_vm4, %v803_v49, %v698_v34 }
 0x278   : > { %v754_v40 = vpop.permute.xlu1 %753  ;;  %v692_v41 = vpop.permute.xlu0 %691 }
 0x279   : > { %v804_v54 = vsel %vm802_vm7, %v801_v50, %v692_v41 }
 0x27a   : > { %v806_v56 = vsel %vm428_vm4, %v804_v54, %v700_v37 }
 0x27c   : > { %v714_v42 = vpop.permute.xlu1 %713  ;;  %v756_v43 = vpop.permute.xlu0 %755 }
 0x280   : > { %v706_v44 = vpop.permute.xlu1 %705  ;;  %v716_v45 = vpop.permute.xlu0 %715 }
 0x281   : > { %v808_v55 = vsel %vm807_vm8, %v805_v51, %v706_v44 }
 0x282   : > { %v811_v57 = vsel %vm810_vm9, %v808_v55, %v714_v42 }
 0x284   : > { %v770_v47 = vpop.permute.xlu1 %769  ;;  %v708_v48 = vpop.permute.xlu0 %707 }
 0x285   : > { %v809_v60 = vsel %vm807_vm8, %v806_v56, %v708_v48 }
 0x286   : > { %v812_v0 = vsel %vm810_vm9, %v809_v60, %v716_v45 }
 0x288   : > { %v730_v52 = vpop.permute.xlu1 %729  ;;  %v772_v53 = vpop.permute.xlu0 %771 }
 0x28c   : > { %v722_v58 = vpop.permute.xlu1 %721  ;;  %v732_v59 = vpop.permute.xlu0 %731 }
 0x28d   : > { %v814_v61 = vsel %vm813_vm10, %v811_v57, %v722_v58 }
 0x28e   : > { %v817_v62 = vsel %vm816_vm11, %v814_v61, %v730_v52 }
 0x28f   : > { %v820_v63 = vsel %vm819_vm12, %v817_v62, %v738_v32 }
 0x290   : > { %v823_v1 = vsel %vm822_vm13, %v820_v63, %v746_v31  ;;  %v778_v2 = vpop.permute.xlu1 %777  ;;  %v724_v3 = vpop.permute.xlu0 %723 }
 0x291   : > { %v826_v4 = vsel %vm825_vm14, %v823_v1, %v754_v40  ;;  %v815_v5 = vsel %vm813_vm10, %v812_v0, %v724_v3 }
 0x292   : > { %v829_v6 = vsel %vm828_vm15, %v826_v4, %v762_v36  ;;  %v818_v7 = vsel %vm816_vm11, %v815_v5, %v732_v59 }
 0x293   : > { %v832_v8 = vsel %vm831_vm0, %v829_v6, %v770_v47  ;;  %v821_v9 = vsel %vm819_vm12, %v818_v7, %v740_v35 }
 0x294   : > { %v824_v10 = vsel %vm822_vm13, %v821_v9, %v748_v33  ;;  %v786_v11 = vpop.permute.xlu1 %785  ;;  %v780_v12 = vpop.permute.xlu0 %779  ;;  %v835_v13 = vsel %vm834_vm1, %v832_v8, %v778_v2 }
 0x295   : > { %v827_v14 = vsel %vm825_vm14, %v824_v10, %v756_v43  ;;  %v838_v17 = vsel %vm837_vm2, %v835_v13, %v786_v11 }
 0x296   : > { %v830_v15 = vsel %vm828_vm15, %v827_v14, %v764_v39 }
 0x297   : > { %v833_v16 = vsel %vm831_vm0, %v830_v15, %v772_v53 }
 0x298   : > { %v794_v18 = vpop.permute.xlu1 %793  ;;  %v788_v19 = vpop.permute.xlu0 %787  ;;  %v836_v20 = vsel %vm834_vm1, %v833_v16, %v780_v12 }
 0x299   : > { %v841_v22 = vsel %vm840_vm3, %v838_v17, %v794_v18  ;;  %v839_v24 = vsel %vm837_vm2, %v836_v20, %v788_v19 }
 0x29a   : > { %v850_v23 = vadd.f32 %v990_v21, %v841_v22 }
 0x29c   : > { %v796_v25 = vpop.permute.xlu0 %795  ;;  %v852_v28 = vmax.f32 %v850_v23, 0.0 }
 0x29d   : > { %v842_v26 = vsel %vm840_vm3, %v839_v24, %v796_v25 }
 0x29e   : > { %v851_v27 = vadd.f32 %v990_v21, %v842_v26 }
 0x2a0   : > { %v853_v29 = vmax.f32 %v851_v27, 0.0 }
 0x2a2   : > { %v1004_v30 = vpack.c.bf16 %v853_v29, %v852_v28 }
 0x2a4   : > { %1005 = vst [vmem:[%s187_s6] sm:$0xff] %v1004_v30  }
 0x2a5   : > { %1170 = shalt.err (!%p1167_p5)
}
 0x2a6   : > { %s1171_s9 = scalar_lea.hbm %s1545_s23, 128  ;;  %s1175_s7 = scalar_lea.hbm %s1599_s3, 256 }
 0x2a7   : > { %p1172_p6 = scmp.ne.s32.totalorder %s1545_s23, %s1171_s9  ;;  %p1176_p10 = scmp.lt.s32.totalorder %s1545_s23, %s1599_s3 }
 0x2a8   : > { %p1177_p11 = scmp.lt.s32.totalorder %s1175_s7, %s1171_s9 }
 0x2a9   : > { %p1173_p7 = pnand %p1172_p6, %p1321_p4 }
 0x2aa   : > { %p1178_p12 = por %p1177_p11, %p1176_p10 }
 0x2ab   : > { %p1174_p9 = pneg %p1173_p7 }
 0x2ad   : > { %p1179_p13 = pnand %p1178_p12, %p1174_p9 }
 0x2af   : > { %1182 = shalt.err (!%p1179_p13)
}
 0x2b0   : > { %s1260_s5 = smov 4  }
 0x2b1   : > { %1072 = dma.vmem_to_hbm [thread:$0]  (%p1321_p4), %s1547_s8, 128, %s1545_s23, %s1549_s26, %s1253_s28, %s1253_s28, %s1260_s5  }
 0x2b2 PF: > { %p1078_p0 = scmp.ge.s32.totalorder %s1233_s17, 2  ;;  %s895_s6 = sand.u32 1, %s1213_s12  }
 0x2b3   : > { %s896_s11 = scalar_lea.sflag [#allocation3], %s895_s6 }
 0x2b4   : > { %p1075_p1 = pnand %p1078_p0, %p1328_p8 }
 0x2b6   : > { %p1076_p2 = pneg %p1075_p1 }
 0x2b8   : > { %1208 = dma.done.wait (%p1076_p2), %s896_s11, 128  }
 0x2b9   : > { %1210 = vsyncadd (%p1076_p2), %s896_s11, 4294967168  ;;  %s16_s17 = sadd.s32 1, %s1233_s17   ;;  %s1602_s12 = smov %s1217_s13 }
 0x2ba   : > { %p13_p3 = scmp.ge.s32.totalorder %s16_s17, 4   ;;  %s1603_s13 = smov %s1221_s14 }
 0x2bb   : > { %s1604_s14 = smov %s1334_s25  ;;  %s1605_s15 = smov %s1229_s16 }
 0x2bc   : > { %s1606_s16 = smov %s1608_s20  ;;  %15 = sbr.rel (!%p13_p3) target bundleno = 4 (0x4), region = 67 }
 0x2c1   :  { %901 = vsyncpa [#allocation3], 1 }
 0x2c2   :  { %903 = vsyncpa [#allocation3 + $0x1], 1 }

</bundles_post_ra>
